<compile_context>
chip_gen: v7x
topology: tpu7x:2x2x1
jax: 0.10.0
libtpu: 0.0.40
codegen_flags: <defaults>
</compile_context>

<pallas_src>
import jax
import jax.numpy as jnp
from jax.experimental import pallas as pl
from jax.experimental.pallas import tpu as pltpu


def _energy_attention_kernel(i_ref, s_ref, w_ref, b_ref, seg_ref, o_ref):
    # Hoist the bias read (single broadcast, not re-evaluated).
    b = b_ref[...]                                            # (1, DP_I)

    # Packed Linear: s_packed @ block-diag(W^T) + packed bias -> (tile, DP_I)
    s_proj = jnp.dot(s_ref[...], w_ref[...],
                     preferred_element_type=jnp.float32) + b

    i_val = i_ref[...].astype(jnp.float32)
    result = jnp.tanh(i_val + s_proj)

    # tanh output is in [-1, 1]: exp() is numerically safe without the usual
    # max-subtraction, so no segmented max is needed.
    e = jnp.exp(result)

    # Segmented sum over each D_I-wide feature group, broadcast back to every
    # lane of its group, via one MXU matmul with a block-diagonal ones matrix.
    denom = jnp.dot(e, seg_ref[...], preferred_element_type=jnp.float32)

    # Divide on the EUP (otherwise idle after tanh/exp), fused into the output.
    inv = pl.reciprocal(denom, approx=True)
    o_ref[...] = (e * i_val * inv).astype(o_ref.dtype)


def energy_attention(I, s, weight, bias, *, tile_rows_packed=1024):
    """I: (B, T, I_shape), s: (B, T, s_shape),
    weight: (I_shape, s_shape)  (PyTorch nn.Linear convention), bias: (I_shape,)"""
    B, T, D_I = I.shape
    D_s = s.shape[-1]
    rows = B * T

    # Lane packing factor: pack PACK feature vectors per 128-lane row.
    PACK = (128 // D_I) if (D_I < 128 and 128 % D_I == 0) else 1
    DP_I = PACK * D_I
    DP_s = PACK * D_s

    # Row tiling in packed rows; keep tiles sublane-aligned (multiple of 8).
    # TILE_RP=1024 packed rows => ~0.5-1.5 MiB/input tile, x2 double-buffers
    # stays far under the 16/32/32 MiB scoped-VMEM defaults of v5e/v6e/v7x.
    r_packed = pl.cdiv(rows, PACK)
    tile_rp = min(tile_rows_packed, ((r_packed + 7) // 8) * 8)
    tile_rp = max(8, (tile_rp // 8) * 8)
    r_padded = pl.cdiv(r_packed, tile_rp) * tile_rp
    rows_pad = r_padded * PACK
    grid = (r_padded // tile_rp,)

    # Pack inputs (pure layout work, done once in the wrapper).
    I2 = jnp.pad(I.reshape(rows, D_I), ((0, rows_pad - rows), (0, 0)))
    s2 = jnp.pad(s.reshape(rows, D_s), ((0, rows_pad - rows), (0, 0)))
    I_p = I2.reshape(r_padded, DP_I)
    s_p = s2.reshape(r_padded, DP_s)

    # Block-diagonal packed weight, tiled bias, segmented-sum ones matrix.
    w_t = weight.T.astype(jnp.float32)                             # (D_s, D_I)
    w_p = jnp.kron(jnp.eye(PACK, dtype=jnp.float32), w_t)          # (DP_s, DP_I)
    b_p = jnp.tile(bias.astype(jnp.float32), PACK).reshape(1, DP_I)
    seg = jnp.kron(jnp.eye(PACK, dtype=jnp.float32),
                   jnp.ones((D_I, D_I), dtype=jnp.float32))        # (DP_I, DP_I)

    cost = pl.CostEstimate(
        flops=2 * r_padded * DP_s * DP_I            # packed Linear
              + 2 * r_padded * DP_I * DP_I          # segmented-sum matmul
              + 6 * r_padded * DP_I,                # elementwise
        transcendentals=3 * r_padded * DP_I,        # tanh + exp + reciprocal
        bytes_accessed=r_padded * (2 * DP_I + DP_s) * 4
                       + (DP_s * DP_I + DP_I * DP_I + DP_I) * 4,
    )

    out_p = pl.pallas_call(
        _energy_attention_kernel,
        out_shape=jax.ShapeDtypeStruct((r_padded, DP_I), I.dtype),
        grid=grid,
        in_specs=[
            pl.BlockSpec((tile_rp, DP_I), lambda i: (i, 0)),   # packed I
            pl.BlockSpec((tile_rp, DP_s), lambda i: (i, 0)),   # packed s
            pl.BlockSpec((DP_s, DP_I), lambda i: (0, 0)),      # weight (resident)
            pl.BlockSpec((1, DP_I), lambda i: (0, 0)),         # bias (resident)
            pl.BlockSpec((DP_I, DP_I), lambda i: (0, 0)),      # seg-sum (resident)
        ],
        out_specs=pl.BlockSpec((tile_rp, DP_I), lambda i: (i, 0)),
        compiler_params=pltpu.CompilerParams(
            dimension_semantics=("parallel",),
        ),
        cost_estimate=cost,
    )(I_p, s_p, w_p, b_p, seg)

    out = out_p.reshape(rows_pad, D_I)[:rows]
    return out.reshape(B, T, D_I)


def energy_attention_ref(I, s, weight, bias):
    s_proj = jnp.einsum("btk,dk->btd", s, weight) + bias
    result = jnp.tanh(I + s_proj)
    alpha = jax.nn.softmax(result, axis=2)
    return alpha * I


if __name__ == "__main__":
    B, T = 2, 8
    I_shape, s_shape = 16, 32

    key = jax.random.PRNGKey(0)
    k1, k2, k3, k4 = jax.random.split(key, 4)

    I = jax.random.normal(k1, (B, T, I_shape), dtype=jnp.float32)
    s = jax.random.normal(k2, (B, T, s_shape), dtype=jnp.float32)
    # nn.Linear(s_shape, I_shape): weight (I_shape, s_shape), bias (I_shape,)
    weight = jax.random.normal(k3, (I_shape, s_shape), dtype=jnp.float32) * 0.1
    bias = jax.random.normal(k4, (I_shape,), dtype=jnp.float32) * 0.1

    out = energy_attention(I, s, weight, bias)
    out = jax.block_until_ready(out)

    ref = energy_attention_ref(I, s, weight, bias)
    assert out.shape == (B, T, I_shape)
    # Tolerance accounts for the approximate EUP reciprocal (~1e-4 rel error).
    assert jnp.allclose(out, ref, atol=2e-3, rtol=2e-3), "mismatch vs reference"

    print("KERNEL_OK")
</pallas_src>

<mosaic_0001>
module attributes {stable_mosaic.version = 11 : i64} {
  func.func @_energy_attention_kernel(%arg0: i32, %arg1: memref<8x128xf32, #tpu.memory_space<vmem>>, %arg2: memref<8x256xf32, #tpu.memory_space<vmem>>, %arg3: memref<256x128xf32, #tpu.memory_space<vmem>>, %arg4: memref<1x128xf32, #tpu.memory_space<vmem>>, %arg5: memref<128x128xf32, #tpu.memory_space<vmem>>, %arg6: memref<8x128xf32, #tpu.memory_space<vmem>>) attributes {dimension_semantics = [#tpu.dimension_semantics<parallel>], iteration_bounds = array<i64: 1>, scalar_prefetch = 0 : i64, scratch_operands = 0 : i64, tpu.core_type = #tpu.core_type<tc>, window_params = [{transform_indices = @transform_0, window_bounds = array<i64: 8, 128>}, {transform_indices = @transform_1, window_bounds = array<i64: 8, 256>}, {pipeline_mode = #tpu.pipeline_mode<synchronous>, transform_indices = @transform_2, window_bounds = array<i64: 256, 128>}, {pipeline_mode = #tpu.pipeline_mode<synchronous>, transform_indices = @transform_3, window_bounds = array<i64: 1, 128>}, {pipeline_mode = #tpu.pipeline_mode<synchronous>, transform_indices = @transform_4, window_bounds = array<i64: 128, 128>}, {transform_indices = @transform_5, window_bounds = array<i64: 8, 128>}]} {
    %c0 = arith.constant 0 : index
    %c0_0 = arith.constant 0 : index
    %0 = vector.load %arg4[%c0, %c0_0] : memref<1x128xf32, #tpu.memory_space<vmem>>, vector<1x128xf32>
    %c0_1 = arith.constant 0 : index
    %c0_2 = arith.constant 0 : index
    %1 = vector.load %arg2[%c0_1, %c0_2] : memref<8x256xf32, #tpu.memory_space<vmem>>, vector<8x256xf32>
    %c0_3 = arith.constant 0 : index
    %c0_4 = arith.constant 0 : index
    %2 = vector.load %arg3[%c0_3, %c0_4] : memref<256x128xf32, #tpu.memory_space<vmem>>, vector<256x128xf32>
    %cst = arith.constant dense<0.000000e+00> : vector<8x128xf32>
    %3 = tpu.matmul %1, %2, %cst {dimension_numbers = #tpu.dot_dimension_numbers<[1], [0], [0], [1], [0, 0, 1, 1], [], []>} : vector<8x256xf32>, vector<256x128xf32>, vector<8x128xf32> -> vector<8x128xf32>
    %4 = vector.broadcast %0 : vector<1x128xf32> to vector<8x128xf32>
    %5 = arith.addf %3, %4 : vector<8x128xf32>
    %c0_5 = arith.constant 0 : index
    %c0_6 = arith.constant 0 : index
    %6 = vector.load %arg1[%c0_5, %c0_6] : memref<8x128xf32, #tpu.memory_space<vmem>>, vector<8x128xf32>
    %7 = arith.addf %6, %5 : vector<8x128xf32>
    %8 = math.tanh %7 : vector<8x128xf32>
    %9 = math.exp %8 : vector<8x128xf32>
    %c0_7 = arith.constant 0 : index
    %c0_8 = arith.constant 0 : index
    %10 = vector.load %arg5[%c0_7, %c0_8] : memref<128x128xf32, #tpu.memory_space<vmem>>, vector<128x128xf32>
    %cst_9 = arith.constant dense<0.000000e+00> : vector<8x128xf32>
    %11 = tpu.matmul %9, %10, %cst_9 {dimension_numbers = #tpu.dot_dimension_numbers<[1], [0], [0], [1], [0, 0, 1, 1], [], []>} : vector<8x128xf32>, vector<128x128xf32>, vector<8x128xf32> -> vector<8x128xf32>
    %12 = tpu.reciprocal %11 {approx = true} : vector<8x128xf32> -> vector<8x128xf32>
    %13 = arith.mulf %9, %6 : vector<8x128xf32>
    %14 = arith.mulf %13, %12 : vector<8x128xf32>
    %c0_10 = arith.constant 0 : index
    %c0_11 = arith.constant 0 : index
    %15 = vector.load %arg6[%c0_10, %c0_11] : memref<8x128xf32, #tpu.memory_space<vmem>>, vector<8x128xf32>
    tpu.vector_store %arg6[%c0_10, %c0_11], %14 {strides = array<i32>} : memref<8x128xf32, #tpu.memory_space<vmem>>, vector<8x128xf32>,
    return
  }
  func.func @transform_0(%arg0: i32) -> (i32, i32) {
    %c0_i32 = arith.constant 0 : i32
    %c0_i32_0 = arith.constant 0 : i32
    return %arg0, %c0_i32 : i32, i32
  }
  func.func @transform_1(%arg0: i32) -> (i32, i32) {
    %c0_i32 = arith.constant 0 : i32
    %c0_i32_0 = arith.constant 0 : i32
    return %arg0, %c0_i32 : i32, i32
  }
  func.func @transform_2(%arg0: i32) -> (i32, i32) {
    %c0_i32 = arith.constant 0 : i32
    %c0_i32_0 = arith.constant 0 : i32
    %c0_i32_1 = arith.constant 0 : i32
    return %c0_i32, %c0_i32_0 : i32, i32
  }
  func.func @transform_3(%arg0: i32) -> (i32, i32) {
    %c0_i32 = arith.constant 0 : i32
    %c0_i32_0 = arith.constant 0 : i32
    %c0_i32_1 = arith.constant 0 : i32
    return %c0_i32, %c0_i32_0 : i32, i32
  }
  func.func @transform_4(%arg0: i32) -> (i32, i32) {
    %c0_i32 = arith.constant 0 : i32
    %c0_i32_0 = arith.constant 0 : i32
    %c0_i32_1 = arith.constant 0 : i32
    return %c0_i32, %c0_i32_0 : i32, i32
  }
  func.func @transform_5(%arg0: i32) -> (i32, i32) {
    %c0_i32 = arith.constant 0 : i32
    %c0_i32_0 = arith.constant 0 : i32
    return %arg0, %c0_i32 : i32, i32
  }
}

</mosaic_0001>

<bundles_post_ra>
// kernel: tpu_custom_call.1
= control target key start
LH: loop header
LB: loop body
LE: loop exit
PB: predicated region body
PF: predicated region fallthrough
CT: control target
= control target key end

     0   :  { %10 = vsyncpa [#allocation3], 0  ;;  %s676_s0 = inlined_call_operand.hbm [shape: f32[8,128], index: 0, kind: input, shape index: {}]   ;;  %s677_s1 = inlined_call_operand.hbm [shape: f32[8,256], index: 1, kind: input, shape index: {}]   ;;  %s678_s2 = inlined_call_operand.hbm [shape: f32[256,128], index: 2, kind: input, shape index: {}]   ;;  %s679_s3 = inlined_call_operand.vmem [shape: f32[1,128], index: 3, kind: input, shape index: {}]   ;;  %s680_s4 = inlined_call_operand.hbm [shape: f32[128,128], index: 4, kind: input, shape index: {}]   ;;  %s681_s5 = inlined_call_operand.hbm [shape: f32[8,128], index: 5, kind: output, shape index: {}]  }
   0x1   :  { %11 = vsyncpa [#allocation6], 0 }
   0x2   :  { %12 = vsyncpa [#allocation9], 0 }
   0x3   :  { %13 = vsyncpa [#allocation4], 0  ;;  %s573_s18 = smov [#allocation5]   ;;  %s574_s20 = smov [#allocation2]  }
   0x4   :  { %s30_s19 = sshll.u32 %s573_s18, 4  ;;  %s20_s21 = sshll.u32 %s574_s20, 4  ;;  %s31_s19 = int_to_ptr.vmem [resolvable:$true] %s30_s19  ;;  %s21_s21 = int_to_ptr.vmem [resolvable:$true] %s20_s21 }
   0x5   :  { %s455_s24 = scalar_lea.hbm %s677_s1, 256 }
   0x6   :  { %p456_p0 = scmp.ne.s32.totalorder %s677_s1, %s455_s24  ;;  %p459_p1 = scmp.lt.u32.totalorder %s455_s24, %s677_s1 }
   0x8   :  { %p461_p2 = pnand %p459_p1, %p456_p0 }
   0xa   :  { %464 = shalt.err (!%p461_p2)
}
   0xb   :  { %s465_s29 = scalar_lea.vmem %s31_s19, 256  ;;  %p470_p4 = scmp.lt.s32.totalorder %s31_s19, %s31_s19 }
   0xc   :  { %p466_p3 = scmp.ne.s32.totalorder %s31_s19, %s465_s29  ;;  %p471_p5 = scmp.lt.s32.totalorder %s465_s29, %s465_s29 }
   0xe   :  { %p472_p6 = por %p471_p5, %p470_p4 }
  0x10   :  { %p473_p7 = pnand %p472_p6, %p466_p3 }
  0x12   :  { %476 = shalt.err (!%p473_p7)
}
  0x13   :  { %33 = dma.hbm_to_vmem [thread:$0]  %s677_s1, 256, %s31_s19, [#allocation6]  }
  0x14   :  { %s477_s9 = scalar_lea.hbm %s676_s0, 128 }
  0x15   :  { %p478_p8 = scmp.ne.s32.totalorder %s676_s0, %s477_s9  ;;  %p481_p9 = scmp.lt.u32.totalorder %s477_s9, %s676_s0 }
  0x17   :  { %p483_p10 = pnand %p481_p9, %p478_p8 }
  0x19   :  { %486 = shalt.err (!%p483_p10)
}
  0x1a   :  { %s487_s14 = scalar_lea.vmem %s21_s21, 128  ;;  %p492_p12 = scmp.lt.s32.totalorder %s21_s21, %s21_s21 }
  0x1b   :  { %p488_p11 = scmp.ne.s32.totalorder %s21_s21, %s487_s14  ;;  %p493_p13 = scmp.lt.s32.totalorder %s487_s14, %s487_s14 }
  0x1d   :  { %p494_p0 = por %p493_p13, %p492_p12 }
  0x1f   :  { %p495_p1 = pnand %p494_p0, %p488_p11 }
  0x21   :  { %498 = shalt.err (!%p495_p1)
}
  0x22   :  { %23 = dma.hbm_to_vmem [thread:$0]  %s676_s0, 128, %s21_s21, [#allocation3]  }
  0x23   :  { %s575_s16 = smov [#allocation7]   ;;  %s499_s20 = scalar_lea.hbm %s678_s2, 4096 }
  0x24   :  { %s39_s17 = sshll.u32 %s575_s16, 4  ;;  %p500_p2 = scmp.ne.s32.totalorder %s678_s2, %s499_s20  ;;  %s40_s17 = int_to_ptr.vmem [resolvable:$true] %s39_s17 }
  0x25   :  { %p503_p3 = scmp.lt.u32.totalorder %s499_s20, %s678_s2 }
  0x27   :  { %p505_p4 = pnand %p503_p3, %p500_p2 }
  0x29   :  { %508 = shalt.err (!%p505_p4)
}
  0x2a   :  { %s509_s26 = scalar_lea.vmem %s40_s17, 4096  ;;  %p514_p6 = scmp.lt.s32.totalorder %s40_s17, %s40_s17 }
  0x2b   :  { %p510_p5 = scmp.ne.s32.totalorder %s40_s17, %s509_s26  ;;  %p515_p7 = scmp.lt.s32.totalorder %s509_s26, %s509_s26 }
  0x2d   :  { %p516_p8 = por %p515_p7, %p514_p6 }
  0x2f   :  { %p517_p9 = pnand %p516_p8, %p510_p5 }
  0x31   :  { %520 = shalt.err (!%p517_p9)
}
  0x32   :  { %s576_s0 = smov 128   ;;  %s577_s21 = smov 8  }
  0x33   :  { %45 = dma.hbm_to_vmem [thread:$0]  %s678_s2, 4096, %s40_s17, [#allocation6], %s576_s0, %s576_s0, %s577_s21  }
  0x34   :  { %s578_s29 = smov [#allocation8]   ;;  %s521_s8 = scalar_lea.hbm %s680_s4, 2048 }
  0x35   :  { %s53_s30 = sshll.u32 %s578_s29, 4  ;;  %p522_p10 = scmp.ne.s32.totalorder %s680_s4, %s521_s8  ;;  %s54_s30 = int_to_ptr.vmem [resolvable:$true] %s53_s30 }
  0x36   :  { %p525_p11 = scmp.lt.u32.totalorder %s521_s8, %s680_s4 }
  0x38   :  { %p527_p12 = pnand %p525_p11, %p522_p10 }
  0x3a   :  { %530 = shalt.err (!%p527_p12)
}
  0x3b   :  { %s531_s13 = scalar_lea.vmem %s54_s30, 2048  ;;  %p536_p0 = scmp.lt.s32.totalorder %s54_s30, %s54_s30 }
  0x3c   :  { %p532_p13 = scmp.ne.s32.totalorder %s54_s30, %s531_s13  ;;  %p537_p1 = scmp.lt.s32.totalorder %s531_s13, %s531_s13 }
  0x3e   :  { %p538_p2 = por %p537_p1, %p536_p0 }
  0x40   :  { %p539_p3 = pnand %p538_p2, %p532_p13 }
  0x42   :  { %542 = shalt.err (!%p539_p3)
}
  0x43   :  { %59 = dma.hbm_to_vmem [thread:$0]  %s680_s4, 2048, %s54_s30, [#allocation9], %s576_s0, %s576_s0, %s577_s21  }
  0x44   :  { %565 = dma.done.wait [#allocation3], 128  }
  0x45   :  { %566 = vsyncadd [#allocation3], 4294967168 }
  0x46   :  { %567 = dma.done.wait [#allocation6], 4352  }
  0x47   :  { %568 = vsyncadd [#allocation6], 4294962944 }
  0x48   :  { %569 = dma.done.wait [#allocation9], 2048  }
  0x49   :  { %570 = vsyncadd [#allocation9], 4294965248  ;;  %v91_v0 = vld [vmem:[#allocation7 + $0x80] sm:$0xff]  ;;  %v92_v1 = vld [vmem:[#allocation7 + $0x88] sm:$0xff]  ;;  %v579_v53 = vmov 0.0|0.0   ;;  %vm580_vm0 = vmmov 0  }
  0x4a   :  { %v75_v2 = vld [vmem:[#allocation7] sm:$0xff]  ;;  %v383_v3 = vpack.c.bf16 %v92_v1, %v91_v0  ;;  %v76_v4 = vld [vmem:[#allocation7 + $0x8] sm:$0xff]  ;;  %v93_v5 = vld [vmem:[#allocation7 + $0x90] sm:$0xff]  ;;  %415 = vmatprep.subr.bf16.mxu1 %v579_v53  ;;  %s582_s15 = smov [#allocation10]  }
  0x4b   :  { %v94_v6 = vld [vmem:[#allocation7 + $0x98] sm:$0xff]  ;;  %v385_v7 = vpack.c.bf16 %v76_v4, %v75_v2  ;;  %v77_v9 = vld [vmem:[#allocation7 + $0x10] sm:$0xff]  ;;  %v95_v11 = vld [vmem:[#allocation7 + $0xa0] sm:$0xff]  ;;  %s284_s16 = sshll.u32 %s582_s15, 4  ;;  %s285_s16 = int_to_ptr.vmem [resolvable:$true] %s284_s16 }
  0x4c   :  { %v387_v8 = vpack.c.bf16 %v94_v6, %v93_v5  ;;  %v78_v10 = vld [vmem:[#allocation7 + $0x18] sm:$0xff]  ;;  %384 = vmatprep.subr.bf16.mxu0 %v383_v3  ;;  %v96_v12 = vld [vmem:[#allocation7 + $0xa8] sm:$0xff]  ;;  %v79_v15 = vld [vmem:[#allocation7 + $0x20] sm:$0xff]  ;;  %p548_p5 = scmp.lt.s32.totalorder %s285_s16, %s285_s16 }
  0x4d   :  { %386 = vmatpush3.bf16.msra.mxu0 %v385_v7  ;;  %v389_v13 = vpack.c.bf16 %v78_v10, %v77_v9  ;;  %v391_v14 = vpack.c.bf16 %v96_v12, %v95_v11  ;;  %v80_v16 = vld [vmem:[#allocation7 + $0x28] sm:$0xff]  ;;  %v97_v17 = vld [vmem:[#allocation7 + $0xb0] sm:$0xff]  ;;  %v98_v18 = vld [vmem:[#allocation7 + $0xb8] sm:$0xff]  ;;  %v581_v10 = vmov 0.0  }
  0x4e   :  { %388 = vmatprep.subr.bf16.mxu0 %v387_v8  ;;  %v393_v19 = vpack.c.bf16 %v80_v16, %v79_v15  ;;  %v395_v20 = vpack.c.bf16 %v98_v18, %v97_v17  ;;  %v81_v21 = vld [vmem:[#allocation7 + $0x30] sm:$0xff]  ;;  %v82_v22 = vld [vmem:[#allocation7 + $0x38] sm:$0xff]  ;;  %v99_v23 = vld [vmem:[#allocation7 + $0xc0] sm:$0xff]  ;;  %380 = vmatprep.mubr.msk.f32.mxu1 %vm580_vm0, %v581_v10 }
  0x4f   :  { %v100_v24 = vld [vmem:[#allocation7 + $0xc8] sm:$0xff]  ;;  %v74_v25 = vld [vmem:[#allocation5 + $0x8] sm:$0xff]  ;;  %v397_v26 = vpack.c.bf16 %v82_v22, %v81_v21  ;;  %v83_v28 = vld [vmem:[#allocation7 + $0x40] sm:$0xff] }
  0x50   :  { %177 = vmatprep.mubr.f32.mxu0 %v74_v25  ;;  %v399_v27 = vpack.c.bf16 %v100_v24, %v99_v23  ;;  %v84_v29 = vld [vmem:[#allocation7 + $0x48] sm:$0xff]  ;;  %v101_v30 = vld [vmem:[#allocation7 + $0xd0] sm:$0xff]  ;;  %v102_v31 = vld [vmem:[#allocation7 + $0xd8] sm:$0xff] }
  0x51   :  { %390 = vmatpush3.bf16.msra.mxu0 %v389_v13  ;;  %v401_v32 = vpack.c.bf16 %v84_v29, %v83_v28  ;;  %v403_v33 = vpack.c.bf16 %v102_v31, %v101_v30  ;;  %v85_v34 = vld [vmem:[#allocation7 + $0x50] sm:$0xff]  ;;  %v86_v35 = vld [vmem:[#allocation7 + $0x58] sm:$0xff]  ;;  %v103_v36 = vld [vmem:[#allocation7 + $0xe0] sm:$0xff] }
  0x52   :  { %392 = vmatprep.subr.bf16.mxu0 %v391_v14  ;;  %v104_v37 = vld [vmem:[#allocation7 + $0xe8] sm:$0xff]  ;;  %v405_v38 = vpack.c.bf16 %v86_v35, %v85_v34  ;;  %v87_v40 = vld [vmem:[#allocation7 + $0x60] sm:$0xff]  ;;  %v105_v42 = vld [vmem:[#allocation7 + $0xf0] sm:$0xff] }
  0x53   :  { %v407_v39 = vpack.c.bf16 %v104_v37, %v103_v36  ;;  %v88_v41 = vld [vmem:[#allocation7 + $0x68] sm:$0xff]  ;;  %v106_v43 = vld [vmem:[#allocation7 + $0xf8] sm:$0xff]  ;;  %v89_v46 = vld [vmem:[#allocation7 + $0x70] sm:$0xff] }
  0x54   :  { %v409_v44 = vpack.c.bf16 %v88_v41, %v87_v40  ;;  %v411_v45 = vpack.c.bf16 %v106_v43, %v105_v42  ;;  %v90_v47 = vld [vmem:[#allocation7 + $0x78] sm:$0xff]  ;;  %v73_v49 = vld [vmem:[#allocation5] sm:$0xff]  ;;  %v188_v50 = vld [vmem:[#allocation8] sm:$0xff] }
  0x55   :  { %394 = vmatpush3.bf16.msra.mxu0 %v393_v19  ;;  %v413_v48 = vpack.c.bf16 %v90_v47, %v89_v46  ;;  %v189_v51 = vld [vmem:[#allocation8 + $0x8] sm:$0xff]  ;;  %v190_v54 = vld [vmem:[#allocation8 + $0x10] sm:$0xff]  ;;  %v191_v55 = vld [vmem:[#allocation8 + $0x18] sm:$0xff] }
  0x56   :  { %396 = vmatprep.subr.bf16.mxu0 %v395_v20  ;;  %v416_v52 = vpack.c.bf16 %v189_v51, %v188_v50  ;;  %v419_v56 = vpack.c.bf16 %v191_v55, %v190_v54  ;;  %v192_v57 = vld [vmem:[#allocation8 + $0x20] sm:$0xff]  ;;  %v193_v58 = vld [vmem:[#allocation8 + $0x28] sm:$0xff]  ;;  %v194_v60 = vld [vmem:[#allocation8 + $0x30] sm:$0xff] }
  0x57   :  { %v422_v59 = vpack.c.bf16 %v193_v58, %v192_v57  ;;  %v195_v61 = vld [vmem:[#allocation8 + $0x38] sm:$0xff]  ;;  %v196_v63 = vld [vmem:[#allocation8 + $0x40] sm:$0xff]  ;;  %v197_v0 = vld [vmem:[#allocation8 + $0x48] sm:$0xff] }
  0x58   :  { %417 = vmatpush3.bf16.msra.mxu1 %v416_v52  ;;  %v425_v62 = vpack.c.bf16 %v195_v61, %v194_v60  ;;  %v428_v1 = vpack.c.bf16 %v197_v0, %v196_v63  ;;  %v198_v2 = vld [vmem:[#allocation8 + $0x50] sm:$0xff]  ;;  %v199_v3 = vld [vmem:[#allocation8 + $0x58] sm:$0xff]  ;;  %v200_v5 = vld [vmem:[#allocation8 + $0x60] sm:$0xff] }
  0x59   :  { %398 = vmatpush3.bf16.msra.mxu0 %v397_v26  ;;  %418 = vmatprep.subr.bf16.mxu1 %v579_v53  ;;  %v431_v4 = vpack.c.bf16 %v199_v3, %v198_v2  ;;  %v201_v6 = vld [vmem:[#allocation8 + $0x68] sm:$0xff]  ;;  %v202_v8 = vld [vmem:[#allocation8 + $0x70] sm:$0xff]  ;;  %v203_v9 = vld [vmem:[#allocation8 + $0x78] sm:$0xff] }
  0x5a   :  { %400 = vmatprep.subr.bf16.mxu0 %v399_v27  ;;  %v434_v7 = vpack.c.bf16 %v201_v6, %v200_v5  ;;  %v437_v11 = vpack.c.bf16 %v203_v9, %v202_v8  ;;  %v295_v13 = vld [vmem:[%s679_s3] ss:$0 sm:$0xff]  ;;  %s543_s3 = scalar_lea.vmem %s285_s16, 128 }
  0x5b   :  { %v183_v16 = vld [vmem:[#allocation2] sm:$0xff]  ;;  %p544_p4 = scmp.ne.s32.totalorder %s285_s16, %s543_s3  ;;  %p549_p6 = scmp.lt.s32.totalorder %s543_s3, %s543_s3 }
  0x5c   :  { %420 = vmatpush3.bf16.msra.mxu1 %v419_v56 }
  0x5d   :  { %402 = vmatpush3.bf16.msra.mxu0 %v401_v32  ;;  %421 = vmatprep.subr.bf16.mxu1 %v579_v53  ;;  %p550_p7 = por %p549_p6, %p548_p5 }
  0x5e   :  { %404 = vmatprep.subr.bf16.mxu0 %v403_v33 }
  0x5f   :  { %p551_p8 = pnand %p550_p7, %p544_p4 }
  0x60   :  { %423 = vmatpush3.bf16.msra.mxu1 %v422_v59 }
  0x61   :  { %406 = vmatpush3.bf16.msra.mxu0 %v405_v38  ;;  %424 = vmatprep.subr.bf16.mxu1 %v579_v53 }
  0x62   :  { %408 = vmatprep.subr.bf16.mxu0 %v407_v39 }
  0x64   :  { %426 = vmatpush3.bf16.msra.mxu1 %v425_v62 }
  0x65   :  { %410 = vmatpush3.bf16.msra.mxu0 %v409_v44  ;;  %427 = vmatprep.subr.bf16.mxu1 %v579_v53 }
  0x66   :  { %412 = vmatprep.subr.bf16.mxu0 %v411_v45 }
  0x68   :  { %429 = vmatpush3.bf16.msra.mxu1 %v428_v1 }
  0x69   :  { %414 = vmatpush3.bf16.msra.mxu0 %v413_v48  ;;  %430 = vmatprep.subr.bf16.mxu1 %v579_v53 }
  0x6c   :  { %178 = vmatmul.mubr.f32.vlgmr.msra.gmra.mrb[0].mxu0 %v73_v49  ;;  %432 = vmatpush3.bf16.msra.mxu1 %v431_v4 }
  0x6d   :  { %433 = vmatprep.subr.bf16.mxu1 %v579_v53 }
  0x70   :  { %435 = vmatpush3.bf16.msra.mxu1 %v434_v7 }
  0x71   :  { %436 = vmatprep.subr.bf16.mxu1 %v579_v53 }
  0x74   :  { %438 = vmatpush3.bf16.msra.mxu1 %v437_v11 }
 0x13f   :  { %v328_v12 = vpop.f32.mrb[0].mxu0 }
 0x140   :  { %v329_v14 = vpop.f32.mrb[1].mxu0 }
 0x141   :  { %v330_v15 = vadd.f32 %v329_v14, %v328_v12 }
 0x143   :  { %v180_v17 = vadd.f32 %v330_v15, %v295_v13 }
 0x145   :  { %v184_v18 = vadd.f32 %v183_v16, %v180_v17 }
 0x147   :  { %449 = vtanh.f32 %v184_v18 }
 0x151   :  { %v450_v19 = vpop.eup %449 }
 0x152   :  { %v186_v20 = vmul.f32 1.442695, %v450_v19 }
 0x154   :  { %451 = vpow2.f32 %v186_v20 }
 0x15e   :  { %v452_v21 = vpop.eup %451 }
 0x15f   :  { %381 = vmatmul.mubr.f32.vlgmr.msra.gmra.mrb[0].mxu1 %v452_v21  ;;  %v275_v22 = vmul.f32 %v452_v21, %v183_v16 }
 0x232   :  { %v270_v23 = vpop.f32.mrb[0].mxu1 }
 0x233   :  { %453 = vrcp.f32 %v270_v23  ;;  %v382_v24 = vpop.f32.mrb[1].mxu1 }
 0x23d   :  { %v454_v25 = vpop.eup %453 }
 0x23e   :  { %v276_v26 = vmul.f32 %v454_v25, %v275_v22 }
 0x240   :  { %277 = vst [vmem:[#allocation10] sm:$0xff] %v276_v26 }
 0x241   :  { %554 = shalt.err (!%p551_p8)
}
 0x242   :  { %s555_s19 = scalar_lea.hbm %s681_s5, 128 }
 0x243   :  { %p556_p9 = scmp.ne.s32.totalorder %s681_s5, %s555_s19  ;;  %p559_p10 = scmp.lt.u32.totalorder %s555_s19, %s681_s5 }
 0x245   :  { %p561_p11 = pnand %p559_p10, %p556_p9 }
 0x247   :  { %564 = shalt.err (!%p561_p11)
}
 0x248   :  { %287 = dma.vmem_to_hbm [thread:$0]  %s285_s16, 128, %s681_s5, [#allocation4]  }
 0x249   :  { %571 = dma.done.wait [#allocation4], 128  }
 0x24a   :  { %572 = vsyncadd [#allocation4], 4294967168 }
 0x24b   :  { %291 = vsyncpa [#allocation3], 1 }
 0x24c   :  { %292 = vsyncpa [#allocation6], 1 }
 0x24d   :  { %293 = vsyncpa [#allocation9], 1 }
 0x24e   :  { %294 = vsyncpa [#allocation4], 1 }

</bundles_post_ra>
